<compile_context>
chip_gen: v7x
topology: tpu7x:2x2x1
jax: 0.10.0
libtpu: 0.0.40
codegen_flags: <defaults>
</compile_context>

<pallas_src>
import functools

import jax
import jax.numpy as jnp
from jax.experimental import pallas as pl
from jax.experimental.pallas import tpu as pltpu


INPUT_SIZE = 128
OUTPUT_SIZE = 64

SMALL_BATCH = 4096     # gridless path up to here (everything VMEM-resident, one MXU issue)
TILE_MED = 4096        # guarantees >= 2 grid steps whenever the tiled path is taken
TILE_BIG = 8192        # larger tile once the grid already has several steps


def linear_kernel(x_ref, w_ref, b_ref, o_ref):
    # y = x @ W_t + b ; cast x->bf16 in-kernel (VPU), bf16 MXU matmul, f32 accumulate,
    # f32 bias add in the epilogue, store 64-lane f32 output.
    x_bf16 = x_ref[...].astype(jnp.bfloat16)
    acc = jnp.dot(x_bf16, w_ref[...], preferred_element_type=jnp.float32)
    o_ref[...] = (acc + b_ref[...]).astype(o_ref.dtype)


def prepare_params(weight, bias):
    """One-time param prep (do NOT call per forward).

    weight: [out, in] (PyTorch nn.Linear convention), bias: [out].
    Returns W_t [in, out] in bf16 (pre-transposed, MXU operand) and bias [1, out] in f32.
    """
    w_t = jnp.asarray(weight, jnp.float32).T.astype(jnp.bfloat16)   # (in, out)
    b_p = jnp.asarray(bias, jnp.float32).reshape(1, -1)             # (1, out)
    return w_t, b_p


@jax.jit
def simple_net_forward(x, w_bf16, b_pad):
    """x: [B, in] f32; w_bf16: [in, out] bf16 (pre-transposed); b_pad: [1, out] f32."""
    B, in_f = x.shape
    out_f = w_bf16.shape[1]

    if B <= SMALL_BATCH:
        # Small batch: no grid, whole operands resident in VMEM, single MXU issue,
        # 64-lane output written directly (no padding, no host slice).
        return pl.pallas_call(
            linear_kernel,
            out_shape=jax.ShapeDtypeStruct((B, out_f), jnp.float32),
            in_specs=[
                pl.BlockSpec(memory_space=pltpu.MemorySpace.VMEM),
                pl.BlockSpec(memory_space=pltpu.MemorySpace.VMEM),
                pl.BlockSpec(memory_space=pltpu.MemorySpace.VMEM),
            ],
            out_specs=pl.BlockSpec(memory_space=pltpu.MemorySpace.VMEM),
        )(x, w_bf16, b_pad)

    # Large batch: tile the batch axis. B > SMALL_BATCH guarantees nb >= 2 with TILE_MED,
    # so the "parallel" axis actually shards across both v7x TensorCores.
    tb = TILE_BIG if B > 4 * TILE_MED else TILE_MED
    nb = pl.cdiv(B, tb)                      # ragged last block handled by Pallas (masked writes)
    return pl.pallas_call(
        linear_kernel,
        out_shape=jax.ShapeDtypeStruct((B, out_f), jnp.float32),
        grid=(nb,),
        in_specs=[
            pl.BlockSpec((tb, in_f), lambda i: (i, 0)),      # streaming f32 x
            pl.BlockSpec((in_f, out_f), lambda i: (0, 0)),   # resident bf16 weight
            pl.BlockSpec((1, out_f), lambda i: (0, 0)),      # resident f32 bias
        ],
        out_specs=pl.BlockSpec((tb, out_f), lambda i: (i, 0)),
        compiler_params=pltpu.CompilerParams(
            dimension_semantics=("parallel",),               # megacore sharding on v7x
        ),
    )(x, w_bf16, b_pad)


def _check(x, weight, bias, y):
    # Tight check against the same bf16-rounded operands + f32 accumulation.
    x_q = x.astype(jnp.bfloat16).astype(jnp.float32)
    w_q = weight.astype(jnp.bfloat16).astype(jnp.float32)
    y_ref_q = x_q @ w_q.T + bias
    assert jnp.allclose(y, y_ref_q, atol=1e-4, rtol=1e-4)
    # Loose sanity check against pure-f32 nn.Linear semantics (bf16 operand rounding).
    y_ref = x @ weight.T + bias
    assert jnp.allclose(y, y_ref, atol=5e-2, rtol=5e-2)


if __name__ == "__main__":
    input_size, output_size = INPUT_SIZE, OUTPUT_SIZE
    batch = 8

    key = jax.random.PRNGKey(0)
    kx, kw, kb, kx2 = jax.random.split(key, 4)

    # Deterministic parameter init mimicking nn.Linear's U(-1/sqrt(in), 1/sqrt(in)).
    bound = 1.0 / (input_size ** 0.5)
    weight = jax.random.uniform(kw, (output_size, input_size),
                                minval=-bound, maxval=bound, dtype=jnp.float32)
    bias = jax.random.uniform(kb, (output_size,),
                              minval=-bound, maxval=bound, dtype=jnp.float32)
    x = jax.random.normal(kx, (batch, input_size), dtype=jnp.float32)

    # Param prep happens once (not per forward call).
    w_bf16, b_pad = prepare_params(weight, bias)

    # Small-batch (gridless) path.
    y = simple_net_forward(x, w_bf16, b_pad)
    jax.block_until_ready(y)
    assert y.shape == (batch, output_size)
    _check(x, weight, bias, y)

    # Tiled path with a ragged last block (exercises grid + masked partial writeback).
    x_big = jax.random.normal(kx2, (9000, input_size), dtype=jnp.float32)
    y_big = simple_net_forward(x_big, w_bf16, b_pad)
    jax.block_until_ready(y_big)
    assert y_big.shape == (9000, output_size)
    _check(x_big, weight, bias, y_big)

    print("KERNEL_OK")
</pallas_src>

<mosaic_0001>
module attributes {stable_mosaic.version = 11 : i64} {
  func.func @linear_kernel(%arg0: memref<8x128xf32, #tpu.memory_space<vmem>>, %arg1: memref<128x64xbf16, #tpu.memory_space<vmem>>, %arg2: memref<1x64xf32, #tpu.memory_space<vmem>>, %arg3: memref<8x64xf32, #tpu.memory_space<vmem>>) attributes {dimension_semantics = [], scalar_prefetch = 0 : i64, scratch_operands = 0 : i64, tpu.core_type = #tpu.core_type<tc>} {
    %c0 = arith.constant 0 : index
    %c0_0 = arith.constant 0 : index
    %0 = vector.load %arg0[%c0, %c0_0] : memref<8x128xf32, #tpu.memory_space<vmem>>, vector<8x128xf32>
    %1 = arith.truncf %0 : vector<8x128xf32> to vector<8x128xbf16>
    %c0_1 = arith.constant 0 : index
    %c0_2 = arith.constant 0 : index
    %2 = vector.load %arg1[%c0_1, %c0_2] : memref<128x64xbf16, #tpu.memory_space<vmem>>, vector<128x64xbf16>
    %cst = arith.constant dense<0.000000e+00> : vector<8x64xf32>
    %3 = tpu.matmul %1, %2, %cst {dimension_numbers = #tpu.dot_dimension_numbers<[1], [0], [0], [1], [0, 0, 1, 1], [], []>} : vector<8x128xbf16>, vector<128x64xbf16>, vector<8x64xf32> -> vector<8x64xf32>
    %c0_3 = arith.constant 0 : index
    %c0_4 = arith.constant 0 : index
    %4 = vector.load %arg2[%c0_3, %c0_4] : memref<1x64xf32, #tpu.memory_space<vmem>>, vector<1x64xf32>
    %5 = vector.broadcast %4 : vector<1x64xf32> to vector<8x64xf32>
    %6 = arith.addf %3, %5 : vector<8x64xf32>
    %c0_5 = arith.constant 0 : index
    %c0_6 = arith.constant 0 : index
    %7 = vector.load %arg3[%c0_5, %c0_6] : memref<8x64xf32, #tpu.memory_space<vmem>>, vector<8x64xf32>
    tpu.vector_store %arg3[%c0_5, %c0_6], %6 {strides = array<i32>} : memref<8x64xf32, #tpu.memory_space<vmem>>, vector<8x64xf32>,
    return
  }
}

</mosaic_0001>

<bundles_post_ra>
// kernel: simple_net_forward.1
= control target key start
LH: loop header
LB: loop body
LE: loop exit
PB: predicated region body
PF: predicated region fallthrough
CT: control target
= control target key end

     0   :  { %v218_v1 = vmov 0.0   ;;  %vm219_vm0 = vmmov 0   ;;  %s283_s0 = inlined_call_operand.vmem [shape: f32[8,128], index: 0, kind: input, shape index: {}]   ;;  %s284_s1 = inlined_call_operand.vmem [shape: bf16[128,64], index: 1, kind: input, shape index: {}]   ;;  %s285_s2 = inlined_call_operand.vmem [shape: f32[1,64], index: 2, kind: input, shape index: {}]   ;;  %s286_s3 = inlined_call_operand.hbm [shape: f32[8,64], index: 3, kind: output, shape index: {}]  }
   0x1   :  { %v186_v0 = vld [vmem:[%s284_s1] sm:$0xff]   ;;  %163 = vmatprep.subr.bf16.mxu0 %v218_v1  ;;  %v187_v2 = vld [vmem:[%s284_s1 + $0x8] sm:$0xff]   ;;  %179 = vmatprep.mubr.msk.bf16.mxu0 %vm219_vm0, %v218_v1  ;;  %v188_v3 = vld [vmem:[%s284_s1 + $0x10] sm:$0xff]  }
   0x2   :  { %164 = vmatpush3.bf16.msra.mxu0 %v186_v0 }
   0x3   :  { %165 = vmatprep.subr.bf16.mxu0 %v218_v1 }
   0x6   :  { %166 = vmatpush3.bf16.msra.mxu0 %v187_v2 }
   0x7   :  { %167 = vmatprep.subr.bf16.mxu0 %v218_v1 }
   0x8   :  { %8 = vsyncpa [#allocation3], 0  ;;  %v189_v4 = vld [vmem:[%s284_s1 + $0x18] sm:$0xff]   ;;  %v190_v5 = vld [vmem:[%s284_s1 + $0x20] sm:$0xff]   ;;  %s220_s5 = smov [#allocation2]   ;;  %vm129_vm1 = vcmask 523264  }
   0x9   :  { %v191_v6 = vld [vmem:[%s284_s1 + $0x28] sm:$0xff]   ;;  %v192_v7 = vld [vmem:[%s284_s1 + $0x30] sm:$0xff]   ;;  %v193_v8 = vld [vmem:[%s284_s1 + $0x38] sm:$0xff]   ;;  %s137_s6 = sshll.u32 %s220_s5, 4  ;;  %s138_s6 = int_to_ptr.vmem [resolvable:$true] %s137_s6 }
   0xa   :  { %168 = vmatpush3.bf16.msra.mxu0 %v188_v3  ;;  %v16_v9 = vld [vmem:[%s283_s0] sm:$0xff]  ;;  %s194_s1 = scalar_lea.vmem %s138_s6, 128  ;;  %p199_p1 = scmp.lt.s32.totalorder %s138_s6, %s138_s6 }
   0xb   :  { %169 = vmatprep.subr.bf16.mxu0 %v218_v1  ;;  %v17_v10 = vpack.c.bf16 %v16_v9, %v16_v9  ;;  %v145_v11 = vld [vmem:[%s285_s2] ss:$0 sm:$0xff]  ;;  %p195_p0 = scmp.ne.s32.totalorder %s138_s6, %s194_s1  ;;  %p200_p2 = scmp.lt.s32.totalorder %s194_s1, %s194_s1 }
   0xd   :  { %p201_p3 = por %p200_p2, %p199_p1 }
   0xe   :  { %170 = vmatpush3.bf16.msra.mxu0 %v189_v4 }
   0xf   :  { %171 = vmatprep.subr.bf16.mxu0 %v218_v1  ;;  %p202_p4 = pnand %p201_p3, %p195_p0 }
  0x12   :  { %172 = vmatpush3.bf16.msra.mxu0 %v190_v5 }
  0x13   :  { %173 = vmatprep.subr.bf16.mxu0 %v218_v1 }
  0x16   :  { %174 = vmatpush3.bf16.msra.mxu0 %v191_v6 }
  0x17   :  { %175 = vmatprep.subr.bf16.mxu0 %v218_v1 }
  0x1a   :  { %176 = vmatpush3.bf16.msra.mxu0 %v192_v7 }
  0x1b   :  { %177 = vmatprep.subr.bf16.mxu0 %v218_v1 }
  0x1e   :  { %178 = vmatpush3.bf16.msra.mxu0 %v193_v8 }
  0x21   :  { %180 = vmatmul.mubr.bf16.vlgmr.msra.gmra.mrb[0].mxu0 %v17_v10 }
  0xf4   :  { %v123_v12 = vpop.f32.mrb[0].mxu0 }
  0xf5   :  { %v124_v13 = vadd.f32 %v145_v11, %v123_v12  ;;  %v181_v14 = vpop.f32.mrb[1].mxu0 }
  0xf6   :  { %v126_v15 = vpop.f32.mrb[2].mxu0 }
  0xf7   :  { %v182_v16 = vpop.f32.mrb[3].mxu0  ;;  %130 = vst.msk [vmem:[#allocation2] sm:$0xff] %vm129_vm1, %v124_v13 }
  0xf8   :  { %205 = shalt.err (!%p202_p4)
}
  0xf9   :  { %s206_s2 = scalar_lea.hbm %s286_s3, 128 }
  0xfa   :  { %p207_p5 = scmp.ne.s32.totalorder %s286_s3, %s206_s2  ;;  %p210_p6 = scmp.lt.u32.totalorder %s206_s2, %s286_s3 }
  0xfc   :  { %p212_p7 = pnand %p210_p6, %p207_p5 }
  0xfe   :  { %215 = shalt.err (!%p212_p7)
}
  0xff   :  { %140 = dma.vmem_to_hbm [thread:$0]  %s138_s6, 128, %s286_s3, [#allocation3]  }
 0x100   :  { %216 = dma.done.wait [#allocation3], 128  }
 0x101   :  { %217 = vsyncadd [#allocation3], 4294967168 }
 0x102   :  { %144 = vsyncpa [#allocation3], 1 }

</bundles_post_ra>
